<compile_context>
chip_gen: v5e
topology: v5e:2x2
jax: 0.10.0
libtpu: 0.0.40
codegen_flags: <defaults>
</compile_context>

<pallas_src>
import jax
import jax.numpy as jnp
from jax.experimental import pallas as pl
from jax.experimental.pallas import tpu as pltpu

EPS = 1e-5


def convlayer_kernel(x_ref, w1_ref, g1_ref, be1_ref, w2_ref, g2_ref, be2_ref,
                     o_ref, pad1_ref, pad2_ref):
    # x_ref  : (N, L, Cin)   channels-last input (unpadded)
    # w1_ref : (3*Cin, Cout) im2col weights, row index = k*Cin + i
    # w2_ref : (3*Cout, Cout)
    # g*/be* : (1, Cout)     BN affine params (lane-dense rows)
    # o_ref  : (N, Cout)     pooled output (lane-dense)
    # pad1_ref / pad2_ref: VMEM scratch (N, L+2, Cin) / (N, L+2, Cout)
    N, L, Cin = x_ref.shape
    Cout = o_ref.shape[1]
    inv_nl = 1.0 / (N * L)
    inv_l = 1.0 / L

    def conv_im2col(x3d, pad_ref, w_ref):
        # Zero-padded (padding=1) conv1d(kernel=3) as a single matmul over
        # im2col patches built from a zeroed VMEM scratch (no concat copy of
        # the activation for the padding itself).
        C = x3d.shape[-1]
        pad_ref[...] = jnp.zeros_like(pad_ref)
        pad_ref[:, 1:L + 1, :] = x3d
        patches = jnp.concatenate(
            [pad_ref[:, 0:L, :], x3d, pad_ref[:, 2:L + 2, :]], axis=-1)
        patches = patches.reshape(N * L, 3 * C)
        return jnp.dot(patches, w_ref[...].astype(jnp.float32),
                       preferred_element_type=jnp.float32)      # (N*L, Cout)

    def bn_relu(h, g_ref, be_ref):
        # Training-mode BN, single-pass stats, folded into one scale/shift FMA.
        s = jnp.sum(h, axis=0, keepdims=True)                   # (1, Cout)
        ss = jnp.sum(h * h, axis=0, keepdims=True)
        mean = s * inv_nl
        var = jnp.maximum(ss * inv_nl - mean * mean, 0.0)       # guard cancellation
        scale = g_ref[...] * jax.lax.rsqrt(var + EPS)
        shift = be_ref[...] - mean * scale
        return jnp.maximum(h * scale + shift, 0.0)

    x = x_ref[...].astype(jnp.float32)                          # (N, L, Cin)

    # conv1 (+BN1+ReLU). Conv bias omitted: cancelled by BN mean subtraction.
    h = bn_relu(conv_im2col(x, pad1_ref, w1_ref), g1_ref, be1_ref)   # (N*L, Cout)

    # conv2 (+BN2+ReLU).
    h2 = bn_relu(conv_im2col(h.reshape(N, L, Cout), pad2_ref, w2_ref),
                 g2_ref, be2_ref)                                    # (N*L, Cout)

    # AdaptiveAvgPool1d(1): mean over L, lane-dense (N, Cout) output.
    o_ref[...] = (jnp.sum(h2.reshape(N, L, Cout), axis=1) * inv_l).astype(o_ref.dtype)


def conv_layer_forward(x, params):
    """x: (N, Cin, L) float32  ->  (N, Cout, 1) float32."""
    w1, b1, g1, be1, w2, b2, g2, be2 = params
    N, Cin, L = x.shape
    Cout = w1.shape[0]

    # Wrapper side is layout plumbing only: no padding, no extra HBM passes
    # beyond the channels-last transpose and tiny weight repacks.
    x_cl = jnp.transpose(x, (0, 2, 1))                              # (N, L, Cin)
    w1_mat = jnp.transpose(w1, (2, 1, 0)).reshape(3 * Cin, Cout)    # row = k*Cin+i
    w2_mat = jnp.transpose(w2, (2, 1, 0)).reshape(3 * Cout, Cout)
    row = lambda v: v.reshape(1, Cout)
    # b1/b2 deliberately NOT passed: per-channel constants before training-mode
    # BN are exactly cancelled by the mean subtraction.

    vmem = pl.BlockSpec(memory_space=pltpu.MemorySpace.VMEM)
    out = pl.pallas_call(
        convlayer_kernel,
        out_shape=jax.ShapeDtypeStruct((N, Cout), jnp.float32),
        in_specs=[vmem] * 7,
        out_specs=vmem,
        scratch_shapes=[pltpu.VMEM((N, L + 2, Cin), jnp.float32),
                        pltpu.VMEM((N, L + 2, Cout), jnp.float32)],
        compiler_params=pltpu.CompilerParams(vmem_limit_bytes=32 * 1024 * 1024),
    )(x_cl, w1_mat, row(g1), row(be1), w2_mat, row(g2), row(be2))
    return out[:, :, None]                                          # (N, Cout, 1)


def reference_forward(x, params):
    """Plain-JAX reference mirroring the PyTorch module (training-mode BN)."""
    w1, b1, g1, be1, w2, b2, g2, be2 = params

    def conv1d(x, w, b):
        xp = jnp.pad(x, ((0, 0), (0, 0), (1, 1)))
        L = x.shape[-1]
        y = sum(jnp.einsum('oik,nil->nol', w[:, :, k:k + 1], xp[:, :, k:k + L])
                for k in range(3))
        return y + b[None, :, None]

    def bn(x, g, be):
        m = jnp.mean(x, axis=(0, 2), keepdims=True)
        v = jnp.mean((x - m) ** 2, axis=(0, 2), keepdims=True)
        return (x - m) * jax.lax.rsqrt(v + EPS) * g[None, :, None] + be[None, :, None]

    h = jax.nn.relu(bn(conv1d(x, w1, b1), g1, be1))
    h = jax.nn.relu(bn(conv1d(h, w2, b2), g2, be2))
    return jnp.mean(h, axis=-1, keepdims=True)


def init_params(key, in_channels, out_channels):
    k1, k2, k3, k4 = jax.random.split(key, 4)
    bound1 = 1.0 / (in_channels * 3) ** 0.5
    bound2 = 1.0 / (out_channels * 3) ** 0.5
    w1 = jax.random.uniform(k1, (out_channels, in_channels, 3),
                            minval=-bound1, maxval=bound1, dtype=jnp.float32)
    b1 = jax.random.uniform(k2, (out_channels,),
                            minval=-bound1, maxval=bound1, dtype=jnp.float32)
    w2 = jax.random.uniform(k3, (out_channels, out_channels, 3),
                            minval=-bound2, maxval=bound2, dtype=jnp.float32)
    b2 = jax.random.uniform(k4, (out_channels,),
                            minval=-bound2, maxval=bound2, dtype=jnp.float32)
    g1 = jnp.ones((out_channels,), jnp.float32)    # BatchNorm weight init = 1
    be1 = jnp.zeros((out_channels,), jnp.float32)  # BatchNorm bias init = 0
    g2 = jnp.ones((out_channels,), jnp.float32)
    be2 = jnp.zeros((out_channels,), jnp.float32)
    return (w1, b1, g1, be1, w2, b2, g2, be2)


if __name__ == "__main__":
    key = jax.random.PRNGKey(0)
    kx, kp = jax.random.split(key)

    N, Cin, Cout, L = 2, 4, 8, 16
    x = jax.random.normal(kx, (N, Cin, L), dtype=jnp.float32)
    params = init_params(kp, Cin, Cout)

    out = jax.block_until_ready(conv_layer_forward(x, params))
    ref = jax.block_until_ready(reference_forward(x, params))

    assert out.shape == (N, Cout, 1), out.shape
    assert jnp.allclose(out, ref, atol=1e-4, rtol=1e-4), (
        float(jnp.max(jnp.abs(out - ref))))

    print("KERNEL_OK")
</pallas_src>

<mosaic_0001>
module attributes {stable_mosaic.version = 11 : i64} {
  func.func @convlayer_kernel(%arg0: memref<2x16x4xf32, #tpu.memory_space<vmem>>, %arg1: memref<12x8xf32, #tpu.memory_space<vmem>>, %arg2: memref<1x8xf32, #tpu.memory_space<vmem>>, %arg3: memref<1x8xf32, #tpu.memory_space<vmem>>, %arg4: memref<24x8xf32, #tpu.memory_space<vmem>>, %arg5: memref<1x8xf32, #tpu.memory_space<vmem>>, %arg6: memref<1x8xf32, #tpu.memory_space<vmem>>, %arg7: memref<2x8xf32, #tpu.memory_space<vmem>>, %arg8: memref<2x18x4xf32, #tpu.memory_space<vmem>>, %arg9: memref<2x18x8xf32, #tpu.memory_space<vmem>>) attributes {dimension_semantics = [], scalar_prefetch = 0 : i64, scratch_operands = 2 : i64, tpu.core_type = #tpu.core_type<tc>} {
    %c0 = arith.constant 0 : index
    %c0_0 = arith.constant 0 : index
    %c0_1 = arith.constant 0 : index
    %0 = vector.load %arg0[%c0, %c0_0, %c0_1] : memref<2x16x4xf32, #tpu.memory_space<vmem>>, vector<2x16x4xf32>
    %cst = arith.constant 0.000000e+00 : f32
    %1 = vector.broadcast %cst : f32 to vector<2x18x4xf32>
    %c0_2 = arith.constant 0 : index
    %c0_3 = arith.constant 0 : index
    %c0_4 = arith.constant 0 : index
    %2 = vector.load %arg8[%c0_2, %c0_3, %c0_4] : memref<2x18x4xf32, #tpu.memory_space<vmem>>, vector<2x18x4xf32>
    tpu.vector_store %arg8[%c0_2, %c0_3, %c0_4], %1 {strides = array<i32>} : memref<2x18x4xf32, #tpu.memory_space<vmem>>, vector<2x18x4xf32>,
    %c0_5 = arith.constant 0 : index
    %c1 = arith.constant 1 : index
    %c0_6 = arith.constant 0 : index
    %3 = vector.load %arg8[%c0_5, %c1, %c0_6] : memref<2x18x4xf32, #tpu.memory_space<vmem>>, vector<2x16x4xf32>
    tpu.vector_store %arg8[%c0_5, %c1, %c0_6], %0 {strides = array<i32>} : memref<2x18x4xf32, #tpu.memory_space<vmem>>, vector<2x16x4xf32>,
    %c0_7 = arith.constant 0 : index
    %c0_8 = arith.constant 0 : index
    %c0_9 = arith.constant 0 : index
    %4 = vector.load %arg8[%c0_7, %c0_8, %c0_9] : memref<2x18x4xf32, #tpu.memory_space<vmem>>, vector<2x16x4xf32>
    %c0_10 = arith.constant 0 : index
    %c2 = arith.constant 2 : index
    %c0_11 = arith.constant 0 : index
    %5 = vector.load %arg8[%c0_10, %c2, %c0_11] : memref<2x18x4xf32, #tpu.memory_space<vmem>>, vector<2x16x4xf32>
    %6 = tpu.concatenate %4, %0, %5 in 2 : vector<2x16x4xf32>, vector<2x16x4xf32>, vector<2x16x4xf32> -> vector<2x16x12xf32>
    %7 = vector.shape_cast %6 : vector<2x16x12xf32> to vector<32x12xf32>
    %c0_12 = arith.constant 0 : index
    %c0_13 = arith.constant 0 : index
    %8 = vector.load %arg1[%c0_12, %c0_13] : memref<12x8xf32, #tpu.memory_space<vmem>>, vector<12x8xf32>
    %cst_14 = arith.constant dense<0.000000e+00> : vector<32x8xf32>
    %9 = tpu.matmul %7, %8, %cst_14 {dimension_numbers = #tpu.dot_dimension_numbers<[1], [0], [0], [1], [0, 0, 1, 1], [], []>} : vector<32x12xf32>, vector<12x8xf32>, vector<32x8xf32> -> vector<32x8xf32>
    %cst_15 = arith.constant dense<0.000000e+00> : vector<8xf32>
    %10 = vector.multi_reduction <add>, %9, %cst_15 [0] : vector<32x8xf32> to vector<8xf32>
    %11 = vector.shape_cast %10 : vector<8xf32> to vector<1x8xf32>
    %12 = arith.mulf %9, %9 : vector<32x8xf32>
    %cst_16 = arith.constant dense<0.000000e+00> : vector<8xf32>
    %13 = vector.multi_reduction <add>, %12, %cst_16 [0] : vector<32x8xf32> to vector<8xf32>
    %14 = vector.shape_cast %13 : vector<8xf32> to vector<1x8xf32>
    %cst_17 = arith.constant 3.125000e-02 : f32
    %15 = vector.broadcast %cst_17 : f32 to vector<1x8xf32>
    %16 = arith.mulf %11, %15 : vector<1x8xf32>
    %cst_18 = arith.constant 3.125000e-02 : f32
    %17 = vector.broadcast %cst_18 : f32 to vector<1x8xf32>
    %18 = arith.mulf %14, %17 : vector<1x8xf32>
    %19 = arith.mulf %16, %16 : vector<1x8xf32>
    %20 = arith.subf %18, %19 : vector<1x8xf32>
    %cst_19 = arith.constant 0.000000e+00 : f32
    %21 = vector.broadcast %cst_19 : f32 to vector<1x8xf32>
    %22 = arith.maximumf %20, %21 : vector<1x8xf32>
    %c0_20 = arith.constant 0 : index
    %c0_21 = arith.constant 0 : index
    %23 = vector.load %arg2[%c0_20, %c0_21] : memref<1x8xf32, #tpu.memory_space<vmem>>, vector<1x8xf32>
    %cst_22 = arith.constant 9.99999974E-6 : f32
    %24 = vector.broadcast %cst_22 : f32 to vector<1x8xf32>
    %25 = arith.addf %22, %24 : vector<1x8xf32>
    %26 = math.rsqrt %25 : vector<1x8xf32>
    %27 = arith.mulf %23, %26 : vector<1x8xf32>
    %c0_23 = arith.constant 0 : index
    %c0_24 = arith.constant 0 : index
    %28 = vector.load %arg3[%c0_23, %c0_24] : memref<1x8xf32, #tpu.memory_space<vmem>>, vector<1x8xf32>
    %29 = arith.mulf %16, %27 : vector<1x8xf32>
    %30 = arith.subf %28, %29 : vector<1x8xf32>
    %31 = vector.broadcast %27 : vector<1x8xf32> to vector<32x8xf32>
    %32 = arith.mulf %9, %31 : vector<32x8xf32>
    %33 = vector.broadcast %30 : vector<1x8xf32> to vector<32x8xf32>
    %34 = arith.addf %32, %33 : vector<32x8xf32>
    %cst_25 = arith.constant 0.000000e+00 : f32
    %35 = vector.broadcast %cst_25 : f32 to vector<32x8xf32>
    %36 = arith.maximumf %34, %35 : vector<32x8xf32>
    %37 = vector.shape_cast %36 : vector<32x8xf32> to vector<2x16x8xf32>
    %cst_26 = arith.constant 0.000000e+00 : f32
    %38 = vector.broadcast %cst_26 : f32 to vector<2x18x8xf32>
    %c0_27 = arith.constant 0 : index
    %c0_28 = arith.constant 0 : index
    %c0_29 = arith.constant 0 : index
    %39 = vector.load %arg9[%c0_27, %c0_28, %c0_29] : memref<2x18x8xf32, #tpu.memory_space<vmem>>, vector<2x18x8xf32>
    tpu.vector_store %arg9[%c0_27, %c0_28, %c0_29], %38 {strides = array<i32>} : memref<2x18x8xf32, #tpu.memory_space<vmem>>, vector<2x18x8xf32>,
    %c0_30 = arith.constant 0 : index
    %c1_31 = arith.constant 1 : index
    %c0_32 = arith.constant 0 : index
    %40 = vector.load %arg9[%c0_30, %c1_31, %c0_32] : memref<2x18x8xf32, #tpu.memory_space<vmem>>, vector<2x16x8xf32>
    tpu.vector_store %arg9[%c0_30, %c1_31, %c0_32], %37 {strides = array<i32>} : memref<2x18x8xf32, #tpu.memory_space<vmem>>, vector<2x16x8xf32>,
    %c0_33 = arith.constant 0 : index
    %c0_34 = arith.constant 0 : index
    %c0_35 = arith.constant 0 : index
    %41 = vector.load %arg9[%c0_33, %c0_34, %c0_35] : memref<2x18x8xf32, #tpu.memory_space<vmem>>, vector<2x16x8xf32>
    %c0_36 = arith.constant 0 : index
    %c2_37 = arith.constant 2 : index
    %c0_38 = arith.constant 0 : index
    %42 = vector.load %arg9[%c0_36, %c2_37, %c0_38] : memref<2x18x8xf32, #tpu.memory_space<vmem>>, vector<2x16x8xf32>
    %43 = tpu.concatenate %41, %37, %42 in 2 : vector<2x16x8xf32>, vector<2x16x8xf32>, vector<2x16x8xf32> -> vector<2x16x24xf32>
    %44 = vector.shape_cast %43 : vector<2x16x24xf32> to vector<32x24xf32>
    %c0_39 = arith.constant 0 : index
    %c0_40 = arith.constant 0 : index
    %45 = vector.load %arg4[%c0_39, %c0_40] : memref<24x8xf32, #tpu.memory_space<vmem>>, vector<24x8xf32>
    %cst_41 = arith.constant dense<0.000000e+00> : vector<32x8xf32>
    %46 = tpu.matmul %44, %45, %cst_41 {dimension_numbers = #tpu.dot_dimension_numbers<[1], [0], [0], [1], [0, 0, 1, 1], [], []>} : vector<32x24xf32>, vector<24x8xf32>, vector<32x8xf32> -> vector<32x8xf32>
    %cst_42 = arith.constant dense<0.000000e+00> : vector<8xf32>
    %47 = vector.multi_reduction <add>, %46, %cst_42 [0] : vector<32x8xf32> to vector<8xf32>
    %48 = vector.shape_cast %47 : vector<8xf32> to vector<1x8xf32>
    %49 = arith.mulf %46, %46 : vector<32x8xf32>
    %cst_43 = arith.constant dense<0.000000e+00> : vector<8xf32>
    %50 = vector.multi_reduction <add>, %49, %cst_43 [0] : vector<32x8xf32> to vector<8xf32>
    %51 = vector.shape_cast %50 : vector<8xf32> to vector<1x8xf32>
    %cst_44 = arith.constant 3.125000e-02 : f32
    %52 = vector.broadcast %cst_44 : f32 to vector<1x8xf32>
    %53 = arith.mulf %48, %52 : vector<1x8xf32>
    %cst_45 = arith.constant 3.125000e-02 : f32
    %54 = vector.broadcast %cst_45 : f32 to vector<1x8xf32>
    %55 = arith.mulf %51, %54 : vector<1x8xf32>
    %56 = arith.mulf %53, %53 : vector<1x8xf32>
    %57 = arith.subf %55, %56 : vector<1x8xf32>
    %cst_46 = arith.constant 0.000000e+00 : f32
    %58 = vector.broadcast %cst_46 : f32 to vector<1x8xf32>
    %59 = arith.maximumf %57, %58 : vector<1x8xf32>
    %c0_47 = arith.constant 0 : index
    %c0_48 = arith.constant 0 : index
    %60 = vector.load %arg5[%c0_47, %c0_48] : memref<1x8xf32, #tpu.memory_space<vmem>>, vector<1x8xf32>
    %cst_49 = arith.constant 9.99999974E-6 : f32
    %61 = vector.broadcast %cst_49 : f32 to vector<1x8xf32>
    %62 = arith.addf %59, %61 : vector<1x8xf32>
    %63 = math.rsqrt %62 : vector<1x8xf32>
    %64 = arith.mulf %60, %63 : vector<1x8xf32>
    %c0_50 = arith.constant 0 : index
    %c0_51 = arith.constant 0 : index
    %65 = vector.load %arg6[%c0_50, %c0_51] : memref<1x8xf32, #tpu.memory_space<vmem>>, vector<1x8xf32>
    %66 = arith.mulf %53, %64 : vector<1x8xf32>
    %67 = arith.subf %65, %66 : vector<1x8xf32>
    %68 = vector.broadcast %64 : vector<1x8xf32> to vector<32x8xf32>
    %69 = arith.mulf %46, %68 : vector<32x8xf32>
    %70 = vector.broadcast %67 : vector<1x8xf32> to vector<32x8xf32>
    %71 = arith.addf %69, %70 : vector<32x8xf32>
    %cst_52 = arith.constant 0.000000e+00 : f32
    %72 = vector.broadcast %cst_52 : f32 to vector<32x8xf32>
    %73 = arith.maximumf %71, %72 : vector<32x8xf32>
    %74 = vector.shape_cast %73 : vector<32x8xf32> to vector<2x16x8xf32>
    %cst_53 = arith.constant dense<0.000000e+00> : vector<2x8xf32>
    %75 = vector.multi_reduction <add>, %74, %cst_53 [1] : vector<2x16x8xf32> to vector<2x8xf32>
    %cst_54 = arith.constant 6.250000e-02 : f32
    %76 = vector.broadcast %cst_54 : f32 to vector<2x8xf32>
    %77 = arith.mulf %75, %76 : vector<2x8xf32>
    %c0_55 = arith.constant 0 : index
    %c0_56 = arith.constant 0 : index
    %78 = vector.load %arg7[%c0_55, %c0_56] : memref<2x8xf32, #tpu.memory_space<vmem>>, vector<2x8xf32>
    tpu.vector_store %arg7[%c0_55, %c0_56], %77 {strides = array<i32>} : memref<2x8xf32, #tpu.memory_space<vmem>>, vector<2x8xf32>,
    return
  }
}

</mosaic_0001>

<bundles_post_ra>
// kernel: tpu_custom_call.1
= control target key start
LH: loop header
LB: loop body
LE: loop exit
PB: predicated region body
PF: predicated region fallthrough
CT: control target
= control target key end

     0   :  { %vm31_vm0 = vcmask 31744   ;;  %vm34_vm1 = vcmask 25600   ;;  %v474_v2 = vmov 0.0   ;;  %s475_s28 = smov 4   ;;  %s650_s0 = inlined_call_operand.vmem [shape: f32[2,16,4], index: 0, kind: input, shape index: {}]   ;;  %s651_s1 = inlined_call_operand.vmem [shape: f32[12,8], index: 1, kind: input, shape index: {}]   ;;  %s652_s2 = inlined_call_operand.vmem [shape: f32[1,8], index: 2, kind: input, shape index: {}]   ;;  %s653_s3 = inlined_call_operand.vmem [shape: f32[1,8], index: 3, kind: input, shape index: {}]   ;;  %s654_s4 = inlined_call_operand.vmem [shape: f32[24,8], index: 4, kind: input, shape index: {}]   ;;  %s655_s5 = inlined_call_operand.vmem [shape: f32[1,8], index: 5, kind: input, shape index: {}]   ;;  %s656_s6 = inlined_call_operand.vmem [shape: f32[1,8], index: 6, kind: input, shape index: {}]   ;;  %s657_s7 = inlined_call_operand.hbm [shape: f32[2,8], index: 7, kind: output, shape index: {}]  }
   0x1   :  { %v28_v0 = vld [vmem:[%s650_s0 + $0x8] sm:$0xff]  ;;  %v29_v1 = vld [vmem:[%s650_s0 + $0x10] sm:$0xff]  ;;  %33 = vst.msk [vmem:[#allocation2 + $0x8] sm:$0xff] %vm31_vm0, %v474_v2  ;;  %v30_v3 = vld [vmem:[%s650_s0 + $0x18] sm:$0xff] }
   0x2   :  { %57 = vrot.lane.b32.xlu0 %v28_v0, %s475_s28  ;;  %59 = vrot.lane.b32.xlu1 %v29_v1, %s475_s28  ;;  %35 = vst.msk [vmem:[#allocation2 + $0x10] sm:$0x3] %vm34_vm1, %v474_v2 }
   0x3   :  { %61 = vrot.lane.b32.xlu2 %v30_v3, %s475_s28 }
   0x4   :  { %12 = vsyncpa [#allocation5], 0  ;;  %38 = vst.msk [vmem:[#allocation2 + $0x28] sm:$0x3] %vm34_vm1, %v474_v2  ;;  %v27_v4 = vld [vmem:[%s650_s0] sm:$0xff]  ;;  %s476_s10 = smov 8  }
   0x5   :  { %40 = vst.msk [vmem:[#allocation2 + $0x9] sm:$0xff] %vm31_vm0, %v28_v0  ;;  %v93_v9 = vld [vmem:[%s651_s1 + $0x8] sm:$0xf]  ;;  %vm107_vm2 = vcmask 1043456   ;;  %v92_v10 = vld [vmem:[%s651_s1] sm:$0xff]  ;;  %vm87_vm3 = vcmask 64512  }
   0x6   :  { %32 = vst.msk [vmem:[#allocation2] sm:$0xff] %vm31_vm0, %v474_v2  ;;  %434 = vmatpush.msk.msra.mxu3 %vm107_vm2, %v93_v9  ;;  %425 = vmatpush.msk.msra.mxu0 %vm107_vm2, %v93_v9  ;;  %vm94_vm4 = vcmask 97280   ;;  %vm211_vm5 = vcmask 58368   ;;  %vm264_vm9 = vcmask 130048   ;;  %vm272_vm10 = vcmask 195584   ;;  %s416_s27 = sshll.u32 %s657_s7, 4  ;;  %s417_s27 = int_to_ptr.hbm [resolvable:$true] %s416_s27 }
   0x7   :  { %36 = vst.msk [vmem:[#allocation2 + $0x18] sm:$0xff] %vm31_vm0, %v474_v2  ;;  %vm405_vm14 = vcmask 1041409  }
   0x8   :  { %37 = vst.msk [vmem:[#allocation2 + $0x20] sm:$0xff] %vm31_vm0, %v474_v2  ;;  %435 = vmatpush.msra.mxu3 %v92_v10  ;;  %126 = vmatpush.msra.mxu0 %v92_v10 }
   0x9   :  { %42 = vst.msk [vmem:[#allocation2 + $0x21] sm:$0xff] %vm31_vm0, %v30_v3 }
   0xa   :  { %41 = vst.msk [vmem:[#allocation2 + $0x19] sm:$0xff] %vm31_vm0, %v29_v1 }
   0xb   :  { %39 = vst.msk [vmem:[#allocation2 + $0x1] sm:$0xff] %vm31_vm0, %v27_v4 }
   0xc   :  { %v48_v5 = vld [vmem:[#allocation2 + $0xa] sm:$0xff]  ;;  %209 = vst.msk [vmem:[#allocation3] sm:$0xff] %vm87_vm3, %v474_v2 }
   0xd   :  { %73 = vrot.lane.b32.xlu0 %v48_v5, %s476_s10  ;;  %210 = vst.msk [vmem:[#allocation3 + $0x8] sm:$0xff] %vm87_vm3, %v474_v2 }
   0xe   :  { %213 = vst.msk [vmem:[#allocation3 + $0x18] sm:$0xff] %vm87_vm3, %v474_v2 }
   0xf   :  { %214 = vst.msk [vmem:[#allocation3 + $0x20] sm:$0xff] %vm87_vm3, %v474_v2 }
  0x10   :  { %v50_v6 = vld [vmem:[#allocation2 + $0x22] sm:$0xff]  ;;  %212 = vst.msk [vmem:[#allocation3 + $0x10] sm:$0x3] %vm211_vm5, %v474_v2 }
  0x11   :  { %v49_v7 = vld [vmem:[#allocation2 + $0x1a] sm:$0xff]  ;;  %77 = vrot.lane.b32.xlu2 %v50_v6, %s476_s10  ;;  %215 = vst.msk [vmem:[#allocation3 + $0x28] sm:$0x3] %vm211_vm5, %v474_v2 }
  0x12   :  { %75 = vrot.lane.b32.xlu1 %v49_v7, %s476_s10  ;;  %v47_v8 = vld [vmem:[#allocation2 + $0x2] sm:$0xff]  ;;  %v45_v17 = vld [vmem:[#allocation2 + $0x18] sm:$0xff]  ;;  %v188_v2 = vld [vmem:[%s653_s3] sm:$0x1] }
  0x13   :  { %v44_v13 = vld [vmem:[#allocation2 + $0x8] sm:$0xff]  ;;  %v43_v22 = vld [vmem:[#allocation2] sm:$0xff] }
  0x14   :  { %v46_v24 = vld [vmem:[#allocation2 + $0x20] sm:$0xff] }
  0x15   :  { %55 = vrot.lane.b32.xlu0 %v27_v4, %s475_s28 }
  0x1a   :  { %71 = vrot.lane.b32.xlu1 %v47_v8, %s476_s10 }
  0x5d   :  { %v62_v18 = vpop.permute.xlu2 %61 }
  0x5e   :  { %v86_v27 = vsel %vm31_vm0, %v46_v24, %v62_v18 }
  0x6b   :  { %v78_v28 = vpop.permute.xlu2 %77 }
  0x6c   :  { %v91_v30 = vsel %vm87_vm3, %v86_v27, %v78_v28 }
  0x74   :  { %v58_v11 = vpop.permute.xlu0 %57  ;;  %v60_v12 = vpop.permute.xlu1 %59 }
  0x75   :  { %v84_v14 = vsel %vm31_vm0, %v44_v13, %v58_v11  ;;  %v85_v20 = vsel %vm31_vm0, %v45_v17, %v60_v12  ;;  %v175_v13 = vld [vmem:[%s652_s2] sm:$0x1]  ;;  %s477_s2 = smov 16  }
  0x7f   :  { %v74_v15 = vpop.permute.xlu0 %73 }
  0x80   :  { %v89_v16 = vsel %vm87_vm3, %v84_v14, %v74_v15 }
  0x81   :  { %427 = vmatmul.msk.f32.vlgmr.msra.gmra.mxu3 %vm94_vm4, %v89_v16 }
  0x84   :  { %v76_v19 = vpop.permute.xlu1 %75 }
  0x85   :  { %v90_v23 = vsel %vm87_vm3, %v85_v20, %v76_v19 }
  0x87   :  { %v56_v21 = vpop.permute.xlu0 %55 }
  0x88   :  { %v83_v25 = vsel %vm31_vm0, %v43_v22, %v56_v21 }
  0x89   :  { %428 = vmatmul.msk.f32.gmra.mxu3 %vm94_vm4, %v90_v23 }
  0x8c   :  { %v72_v26 = vpop.permute.xlu1 %71 }
  0x8d   :  { %v88_v29 = vsel %vm87_vm3, %v83_v25, %v72_v26 }
  0x8e   :  { %426 = vmatmul.msk.f32.vlgmr.msra.gmra.mxu0 %vm94_vm4, %v88_v29 }
  0x91   :  { %429 = vmatmul.msk.f32.gmra.mxu3 %vm94_vm4, %v91_v30 }
 0x104   :  { %v131_v31 = vpop.f32.mrf.mxu3 }
 0x105   :  { %v154_v35 = vmul.f32 %v131_v31, %v131_v31  ;;  %v141_v38 = vsel %vm87_vm3, %v131_v31, 0.0 }
 0x107   :  { %v158_v42 = vsel %vm87_vm3, %v154_v35, 0.0 }
 0x10b   :  { %v575_v32 = vpop.f32.mrf.mxu0 }
 0x10c   :  { %v134_v33 = vpop.f32.mrf.mxu3  ;;  %v153_v34 = vmul.f32 %v575_v32, %v575_v32  ;;  %v140_v36 = vsel %vm87_vm3, %v575_v32, 0.0 }
 0x10d   :  { %v155_v37 = vmul.f32 %v134_v33, %v134_v33  ;;  %v143_v40 = vsel %vm87_vm3, %v134_v33, 0.0  ;;  %v142_v41 = vadd.f32 %v141_v38, %v140_v36  ;;  %v270_v38 = vld [vmem:[%s654_s4 + $0x8] sm:$0xff] }
 0x10e   :  { %v157_v39 = vsel %vm87_vm3, %v153_v34, 0.0 }
 0x10f   :  { %v160_v43 = vsel %vm87_vm3, %v155_v37, 0.0  ;;  %v159_v44 = vadd.f32 %v158_v42, %v157_v39  ;;  %v144_v45 = vadd.f32 %v143_v40, %v142_v41  ;;  %v271_v37 = vld [vmem:[%s654_s4 + $0x10] sm:$0xff]  ;;  %v269_v39 = vld [vmem:[%s654_s4] sm:$0xff] }
 0x110   :  { %298 = vmatpush.msra.mxu1 %v271_v37  ;;  %436 = vmatpush.msra.mxu2 %v271_v37 }
 0x111   :  { %v161_v49 = vadd.f32 %v160_v43, %v159_v44 }
 0x112   :  { %299 = vmatpush.msra.mxu1 %v270_v38  ;;  %437 = vmatpush.msra.mxu2 %v270_v38 }
 0x114   :  { %v137_v46 = vpop.f32.mrf.mxu3  ;;  %300 = vmatpush.msra.mxu1 %v269_v39  ;;  %438 = vmatpush.msra.mxu2 %v269_v39 }
 0x115   :  { %v145_v47 = vsel %vm87_vm3, %v137_v46, 0.0  ;;  %v156_v48 = vmul.f32 %v137_v46, %v137_v46 }
 0x116   :  { %v146_v50 = vadd.f32 %v145_v47, %v144_v45 }
 0x117   :  { %v162_v51 = vsel %vm87_vm3, %v156_v48, 0.0 }
 0x118   :  { %v147_v52 = vrot.slane %v146_v50, 4  ;;  %v163_v53 = vadd.f32 %v162_v51, %v161_v49 }
 0x11a   :  { %v148_v54 = vadd.f32 %v147_v52, %v146_v50  ;;  %v164_v55 = vrot.slane %v163_v53, 4 }
 0x11c   :  { %v149_v56 = vrot.slane %v148_v54, 2  ;;  %v165_v57 = vadd.f32 %v164_v55, %v163_v53 }
 0x11e   :  { %v150_v58 = vadd.f32 %v149_v56, %v148_v54  ;;  %v166_v59 = vrot.slane %v165_v57, 2 }
 0x120   :  { %v151_v60 = vrot.slane %v150_v58, 1  ;;  %v167_v61 = vadd.f32 %v166_v59, %v165_v57 }
 0x122   :  { %v152_v62 = vadd.f32 %v151_v60, %v150_v58  ;;  %v168_v63 = vrot.slane %v167_v61, 1 }
 0x124   :  { %v169_v0 = vadd.f32 %v168_v63, %v167_v61  ;;  %v170_v1 = vmul.f32 0.03125, %v152_v62 }
 0x126   :  { %v171_v3 = vmul.f32 0.03125, %v169_v0  ;;  %v172_v4 = vmul.f32 %v170_v1, %v170_v1 }
 0x128   :  { %v173_v5 = vsub.f32 %v171_v3, %v172_v4 }
 0x12a   :  { %v174_v6 = vmax.f32 %v173_v5, 0.0 }
 0x12c   :  { %v176_v7 = vadd.f32 1e-05, %v174_v6 }
 0x12e   :  { %444 = vrsqrt.f32 %v176_v7  ;;  %vm183_vm7 = vweird.f32 %v176_v7 }
 0x134   :  { %v445_v8 = vpop.eup %444 }
 0x135   :  { %v178_v9 = vmul.f32 %v445_v8, %v176_v7  ;;  %vm184_vm6 = vweird.f32 %v445_v8 }
 0x136   :  { %vm185_vm8 = vmor %vm183_vm7, %vm184_vm6 }
 0x137   :  { %v179_v10 = vmul.f32 %v445_v8, %v178_v9 }
 0x139   :  { %v180_v11 = vmul.f32 0.5, %v179_v10 }
 0x13b   :  { %v181_v12 = vsub.f32 1.5, %v180_v11 }
 0x13d   :  { %v182_v14 = vmul.f32 %v445_v8, %v181_v12 }
 0x13f   :  { %v186_v15 = vsel %vm185_vm8, %v445_v8, %v182_v14 }
 0x140   :  { %v187_v16 = vmul.f32 %v186_v15, %v175_v13 }
 0x142   :  { %v189_v17 = vmul.f32 %v187_v16, %v170_v1  ;;  %v192_v18 = vperm.slane %v187_v16, 0 }
 0x144   :  { %v190_v19 = vsub.f32 %v188_v2, %v189_v17  ;;  %v195_v20 = vmul.f32 %v192_v18, %v131_v31  ;;  %v197_v21 = vmul.f32 %v192_v18, %v137_v46  ;;  %v196_v23 = vmul.f32 %v192_v18, %v134_v33 }
 0x145   :  { %v194_v24 = vmul.f32 %v192_v18, %v575_v32 }
 0x146   :  { %v199_v22 = vperm.slane %v190_v19, 0 }
 0x148   :  { %v202_v25 = vadd.f32 %v199_v22, %v195_v20  ;;  %v204_v26 = vadd.f32 %v199_v22, %v197_v21  ;;  %v203_v27 = vadd.f32 %v199_v22, %v196_v23  ;;  %v201_v28 = vadd.f32 %v199_v22, %v194_v24 }
 0x14a   :  { %v206_v29 = vmax.f32 %v202_v25, 0.0  ;;  %v208_v30 = vmax.f32 %v204_v26, 0.0  ;;  %v207_v34 = vmax.f32 %v203_v27, 0.0  ;;  %v205_v35 = vmax.f32 %v201_v28, 0.0 }
 0x14c   :  { %219 = vst.msk [vmem:[#allocation3 + $0x21] sm:$0xff] %vm87_vm3, %v208_v30  ;;  %236 = vrot.lane.b32.xlu2 %v207_v34, %s476_s10  ;;  %232 = vrot.lane.b32.xlu1 %v205_v35, %s476_s10 }
 0x14d   :  { %217 = vst.msk [vmem:[#allocation3 + $0x9] sm:$0xff] %vm87_vm3, %v206_v29 }
 0x14e   :  { %218 = vst.msk [vmem:[#allocation3 + $0x19] sm:$0xff] %vm87_vm3, %v207_v34 }
 0x14f   :  { %216 = vst.msk [vmem:[#allocation3 + $0x1] sm:$0xff] %vm87_vm3, %v205_v35 }
 0x153   :  { %v227_v31 = vld [vmem:[#allocation3 + $0x22] sm:$0xff] }
 0x154   :  { %254 = vrot.lane.b32.xlu1 %v227_v31, %s477_s2  ;;  %v225_v36 = vld [vmem:[#allocation3 + $0xa] sm:$0xff] }
 0x155   :  { %v226_v32 = vld [vmem:[#allocation3 + $0x1a] sm:$0xff] }
 0x156   :  { %252 = vrot.lane.b32.xlu0 %v226_v32, %s477_s2  ;;  %v224_v33 = vld [vmem:[#allocation3 + $0x2] sm:$0xff]  ;;  %v222_v46 = vld [vmem:[#allocation3 + $0x18] sm:$0xff] }
 0x157   :  { %248 = vrot.lane.b32.xlu2 %v224_v33, %s477_s2  ;;  %v220_v42 = vld [vmem:[#allocation3] sm:$0xff]  ;;  %v221_v56 = vld [vmem:[#allocation3 + $0x8] sm:$0xff] }
 0x158   :  { %v223_v51 = vld [vmem:[#allocation3 + $0x20] sm:$0xff] }
 0x15e   :  { %238 = vrot.lane.b32.xlu0 %v208_v30, %s476_s10 }
 0x15f   :  { %234 = vrot.lane.b32.xlu2 %v206_v29, %s476_s10 }
 0x166   :  { %250 = vrot.lane.b32.xlu0 %v225_v36, %s477_s2 }
 0x1a6   :  { %v237_v40 = vpop.permute.xlu2 %236 }
 0x1a7   :  { %v262_v47 = vsel %vm87_vm3, %v222_v46, %v237_v40 }
 0x1b1   :  { %v249_v43 = vpop.permute.xlu2 %248 }
 0x1b9   :  { %v235_v55 = vpop.permute.xlu2 %234 }
 0x1ba   :  { %v261_v57 = vsel %vm87_vm3, %v221_v56, %v235_v55 }
 0x1be   :  { %v233_v41 = vpop.permute.xlu1 %232 }
 0x1bf   :  { %v260_v44 = vsel %vm87_vm3, %v220_v42, %v233_v41  ;;  %v349_v41 = vld [vmem:[%s655_s5] sm:$0x1]  ;;  %s478_s5 = smov [#allocation4]  }
 0x1c0   :  { %v265_v45 = vsel %vm264_vm9, %v260_v44, %v249_v43 }
 0x1c1   :  { %430 = vmatmul.msk.f32.vlgmr.msra.gmra.mxu1 %vm272_vm10, %v265_v45  ;;  %v362_v45 = vld [vmem:[%s656_s6] sm:$0x1]  ;;  %s414_s6 = sshll.u32 %s478_s5, 4  ;;  %s415_s6 = int_to_ptr.vmem [resolvable:$true] %s414_s6 }
 0x1c6   :  { %v255_v52 = vpop.permute.xlu1 %254 }
 0x1c8   :  { %v253_v48 = vpop.permute.xlu0 %252 }
 0x1c9   :  { %v267_v49 = vsel %vm264_vm9, %v262_v47, %v253_v48 }
 0x1ca   :  { %432 = vmatmul.msk.f32.vlgmr.msra.gmra.mxu2 %vm272_vm10, %v267_v49 }
 0x1d0   :  { %v239_v50 = vpop.permute.xlu0 %238 }
 0x1d1   :  { %v263_v53 = vsel %vm87_vm3, %v223_v51, %v239_v50 }
 0x1d2   :  { %v268_v54 = vsel %vm264_vm9, %v263_v53, %v255_v52 }
 0x1d3   :  { %433 = vmatmul.msk.f32.gmra.mxu2 %vm272_vm10, %v268_v54 }
 0x1d8   :  { %v251_v58 = vpop.permute.xlu0 %250 }
 0x1d9   :  { %v266_v59 = vsel %vm264_vm9, %v261_v57, %v251_v58 }
 0x1da   :  { %431 = vmatmul.msk.f32.gmra.mxu1 %vm272_vm10, %v266_v59 }
 0x23e   :  { %v302_v61 = vpop.f32.mrf.mxu1 }
 0x23f   :  { %v327_v62 = vmul.f32 %v302_v61, %v302_v61  ;;  %v314_v1 = vsel %vm87_vm3, %v302_v61, 0.0 }
 0x241   :  { %v331_v7 = vsel %vm87_vm3, %v327_v62, 0.0 }
 0x24d   :  { %v308_v60 = vpop.f32.mrf.mxu2 }
 0x24e   :  { %v329_v3 = vmul.f32 %v308_v60, %v308_v60  ;;  %v317_v8 = vsel %vm87_vm3, %v308_v60, 0.0 }
 0x250   :  { %v334_v13 = vsel %vm87_vm3, %v329_v3, 0.0 }
 0x256   :  { %v311_v63 = vpop.f32.mrf.mxu2 }
 0x257   :  { %v305_v0 = vpop.f32.mrf.mxu1  ;;  %v330_v9 = vmul.f32 %v311_v63, %v311_v63  ;;  %v319_v14 = vsel %vm87_vm3, %v311_v63, 0.0 }
 0x258   :  { %v315_v4 = vsel %vm87_vm3, %v305_v0, 0.0  ;;  %v328_v5 = vmul.f32 %v305_v0, %v305_v0 }
 0x259   :  { %v316_v6 = vadd.f32 %v315_v4, %v314_v1  ;;  %v336_v2 = vsel %vm87_vm3, %v330_v9, 0.0 }
 0x25a   :  { %v332_v10 = vsel %vm87_vm3, %v328_v5, 0.0 }
 0x25b   :  { %v318_v11 = vadd.f32 %v317_v8, %v316_v6  ;;  %v333_v12 = vadd.f32 %v332_v10, %v331_v7 }
 0x25d   :  { %v320_v15 = vadd.f32 %v319_v14, %v318_v11  ;;  %v335_v16 = vadd.f32 %v334_v13, %v333_v12 }
 0x25f   :  { %v321_v17 = vrot.slane %v320_v15, 4  ;;  %v337_v18 = vadd.f32 %v336_v2, %v335_v16 }
 0x261   :  { %v322_v19 = vadd.f32 %v321_v17, %v320_v15  ;;  %v338_v20 = vrot.slane %v337_v18, 4 }
 0x263   :  { %v323_v21 = vrot.slane %v322_v19, 2  ;;  %v339_v22 = vadd.f32 %v338_v20, %v337_v18 }
 0x265   :  { %v324_v23 = vadd.f32 %v323_v21, %v322_v19  ;;  %v340_v24 = vrot.slane %v339_v22, 2 }
 0x267   :  { %v325_v25 = vrot.slane %v324_v23, 1  ;;  %v341_v26 = vadd.f32 %v340_v24, %v339_v22 }
 0x269   :  { %v326_v27 = vadd.f32 %v325_v25, %v324_v23  ;;  %v342_v28 = vrot.slane %v341_v26, 1 }
 0x26b   :  { %v343_v29 = vadd.f32 %v342_v28, %v341_v26  ;;  %v344_v30 = vmul.f32 0.03125, %v326_v27 }
 0x26d   :  { %v345_v34 = vmul.f32 0.03125, %v343_v29  ;;  %v346_v35 = vmul.f32 %v344_v30, %v344_v30 }
 0x26f   :  { %v347_v31 = vsub.f32 %v345_v34, %v346_v35 }
 0x271   :  { %v348_v32 = vmax.f32 %v347_v31, 0.0 }
 0x273   :  { %v350_v33 = vadd.f32 1e-05, %v348_v32 }
 0x275   :  { %446 = vrsqrt.f32 %v350_v33  ;;  %vm357_vm12 = vweird.f32 %v350_v33 }
 0x27b   :  { %v447_v36 = vpop.eup %446 }
 0x27c   :  { %v352_v37 = vmul.f32 %v447_v36, %v350_v33  ;;  %vm358_vm11 = vweird.f32 %v447_v36 }
 0x27d   :  { %vm359_vm13 = vmor %vm357_vm12, %vm358_vm11 }
 0x27e   :  { %v353_v38 = vmul.f32 %v447_v36, %v352_v37 }
 0x280   :  { %v354_v39 = vmul.f32 0.5, %v353_v38 }
 0x282   :  { %v355_v40 = vsub.f32 1.5, %v354_v39 }
 0x284   :  { %v356_v42 = vmul.f32 %v447_v36, %v355_v40 }
 0x286   :  { %v360_v43 = vsel %vm359_vm13, %v447_v36, %v356_v42 }
 0x287   :  { %v361_v44 = vmul.f32 %v360_v43, %v349_v41 }
 0x289   :  { %v363_v46 = vmul.f32 %v361_v44, %v344_v30  ;;  %v366_v47 = vperm.slane %v361_v44, 0 }
 0x28b   :  { %v364_v48 = vsub.f32 %v362_v45, %v363_v46  ;;  %v368_v49 = vmul.f32 %v366_v47, %v302_v61  ;;  %v369_v50 = vmul.f32 %v366_v47, %v305_v0  ;;  %v370_v51 = vmul.f32 %v366_v47, %v308_v60 }
 0x28c   :  { %v371_v52 = vmul.f32 %v366_v47, %v311_v63 }
 0x28d   :  { %v373_v53 = vperm.slane %v364_v48, 0 }
 0x28f   :  { %v375_v54 = vadd.f32 %v373_v53, %v368_v49  ;;  %v376_v55 = vadd.f32 %v373_v53, %v369_v50  ;;  %v377_v56 = vadd.f32 %v373_v53, %v370_v51  ;;  %v378_v57 = vadd.f32 %v373_v53, %v371_v52 }
 0x291   :  { %v379_v58 = vmax.f32 %v375_v54, 0.0  ;;  %v380_v59 = vmax.f32 %v376_v55, 0.0  ;;  %v381_v62 = vmax.f32 %v377_v56, 0.0  ;;  %v382_v1 = vmax.f32 %v378_v57, 0.0 }
 0x293   :  { %v383_v3 = vsel %vm87_vm3, %v379_v58, 0.0  ;;  %v384_v4 = vsel %vm87_vm3, %v380_v59, 0.0  ;;  %v392_v5 = vsel %vm87_vm3, %v381_v62, 0.0  ;;  %v393_v61 = vsel %vm87_vm3, %v382_v1, 0.0 }
 0x294   :  { %v385_v0 = vadd.f32 %v384_v4, %v383_v3  ;;  %v394_v60 = vadd.f32 %v393_v61, %v392_v5 }
 0x296   :  { %v386_v63 = vrot.slane %v385_v0, 4  ;;  %v395_v6 = vrot.slane %v394_v60, 4 }
 0x298   :  { %v387_v7 = vadd.f32 %v386_v63, %v385_v0  ;;  %v396_v8 = vadd.f32 %v395_v6, %v394_v60 }
 0x29a   :  { %v388_v9 = vrot.slane %v387_v7, 2  ;;  %v397_v10 = vrot.slane %v396_v8, 2 }
 0x29c   :  { %v389_v11 = vadd.f32 %v388_v9, %v387_v7  ;;  %v398_v12 = vadd.f32 %v397_v10, %v396_v8 }
 0x29e   :  { %v390_v13 = vrot.slane %v389_v11, 1  ;;  %v399_v14 = vrot.slane %v398_v12, 1 }
 0x2a0   :  { %v391_v15 = vadd.f32 %v390_v13, %v389_v11  ;;  %v400_v16 = vadd.f32 %v399_v14, %v398_v12 }
 0x2a2   :  { %v401_v2 = vmul.f32 0.0625, %v391_v15  ;;  %v402_v17 = vmul.f32 0.0625, %v400_v16 }
 0x2a4   :  { %v406_v18 = vsel %vm405_vm14, %v402_v17, %v401_v2 }
 0x2a5   :  { %408 = vst.msk [vmem:[#allocation4] sm:$0x3] %vm211_vm5, %v406_v18 }
 0x2a6   :  { %419 = dma.vmem_to_hbm [thread:$0]  %s415_s6, 32, %s417_s27, [#allocation5]  }
 0x2a7   :  { %472 = dma.done.wait [#allocation5], 32  }
 0x2a8   :  { %473 = vsyncadd [#allocation5], 4294967264 }
 0x2a9   :  { %424 = vsyncpa [#allocation5], 1 }

</bundles_post_ra>
